<compile_context>
chip_gen: v5e
topology: v5e:2x2
jax: 0.10.0
libtpu: 0.0.40
codegen_flags: <defaults>
</compile_context>

<pallas_src>
import jax
import jax.numpy as jnp
from jax.experimental import pallas as pl
from jax.experimental.pallas import tpu as pltpu

_LANES = 128
_MAX_ROW_TILE = 1024  # v5e-safe cap (see header comment)


def _round_up(v, m):
    return ((v + m - 1) // m) * m


def _elementwise_kernel(x_ref, f_ref, m_ref):
    x = x_ref[...]
    # Stacked float outputs: add, sub, mul, div, pow (lane-dense slab).
    f_ref[0] = x + 2.0
    f_ref[1] = x - 3.0
    f_ref[2] = x * 4.0
    f_ref[3] = x / 5.0            # true divide (bit-matches torch.div)
    f_ref[4] = x * x              # x ** 2
    # Stacked comparison masks, written in the output ref's dtype:
    # bool when supported (no wrapper cast), int8 on fallback.
    m_dtype = m_ref.dtype
    m_ref[0] = (x > 1.0).astype(m_dtype)
    m_ref[1] = (x < 2.0).astype(m_dtype)
    m_ref[2] = (x == 0.0).astype(m_dtype)


def _pick_row_tile(rows):
    """Row tile: multiple of 32 for clean int8/bool stores, capped so v5e's
    scoped VMEM is respected, and sized so rows > 512 gives >= 2 grid steps
    (megacore sharding on v7x + software pipelining)."""
    if rows <= 512:
        return rows  # single step; block == full array dims, always legal
    tr = _round_up(pl.cdiv(rows, 4), 32)   # target ~4 grid steps
    return max(256, min(tr, _MAX_ROW_TILE))


def _build_call(rows, dtype, mask_dtype):
    tr = _pick_row_tile(rows)
    grid = (pl.cdiv(rows, tr),)

    in_spec = pl.BlockSpec((tr, _LANES), lambda i: (i, 0))
    f_spec = pl.BlockSpec((5, tr, _LANES), lambda i: (0, i, 0))
    m_spec = pl.BlockSpec((3, tr, _LANES), lambda i: (0, i, 0))
    # NOTE: if profiling shows exposed output-writeback DMA on large inputs,
    # add pipeline_mode=pl.Buffered(3) to f_spec (still fits v5e VMEM at
    # tr=1024). Left at default depth here to keep compile risk minimal.

    return pl.pallas_call(
        _elementwise_kernel,
        out_shape=(
            jax.ShapeDtypeStruct((5, rows, _LANES), dtype),
            jax.ShapeDtypeStruct((3, rows, _LANES), mask_dtype),
        ),
        grid=grid,
        in_specs=[in_spec],
        out_specs=(f_spec, m_spec),
        compiler_params=pltpu.CompilerParams(
            dimension_semantics=("parallel",),
        ),
    )


def pt_module_forward(x):
    orig_shape = x.shape
    dtype = x.dtype
    n = x.size
    # TODO(synk): arbitrary shapes would need row padding + tail masking.
    assert n % _LANES == 0, "example sizes chosen so total elements % 128 == 0"
    rows = n // _LANES
    x2d = x.reshape(rows, _LANES)

    # Preferred path: bool mask outputs straight from the kernel (one launch,
    # one HBM pass). Fallback: int8 slab + a single fused bool cast.
    try:
        f_out, m_out = _build_call(rows, dtype, jnp.bool_)(x2d)
        jax.block_until_ready(m_out)
        masks = m_out
    except Exception:
        f_out, m_out = _build_call(rows, dtype, jnp.int8)(x2d)
        masks = m_out.astype(jnp.bool_)

    # Metadata-only slices / reshapes.
    return {
        'addition': f_out[0].reshape(orig_shape),
        'subtraction': f_out[1].reshape(orig_shape),
        'multiplication': f_out[2].reshape(orig_shape),
        'division': f_out[3].reshape(orig_shape),
        'power': f_out[4].reshape(orig_shape),
        'greater_than': masks[0].reshape(orig_shape),
        'less_than': masks[1].reshape(orig_shape),
        'equal_to': masks[2].reshape(orig_shape),
    }


if __name__ == "__main__":
    key = jax.random.PRNGKey(0)
    x = jax.random.normal(key, (2, 4, 16, 16), dtype=jnp.float32)

    out = pt_module_forward(x)
    jax.block_until_ready(out)

    # Correctness check against plain-JAX reference of the torch module.
    ref = {
        'addition': x + 2,
        'subtraction': x - 3,
        'multiplication': x * 4,
        'division': x / 5,
        'power': x ** 2,
        'greater_than': x > 1,
        'less_than': x < 2,
        'equal_to': x == 0,
    }
    for k in ref:
        assert out[k].shape == ref[k].shape, k
        assert out[k].dtype == ref[k].dtype, k
        if out[k].dtype == jnp.bool_:
            assert bool(jnp.all(out[k] == ref[k])), k
        else:
            assert bool(jnp.allclose(out[k], ref[k], rtol=1e-6, atol=1e-6)), k

    print("KERNEL_OK")
</pallas_src>

<mosaic_0001>
module attributes {stable_mosaic.version = 11 : i64} {
  func.func @_elementwise_kernel(%arg0: i32, %arg1: memref<16x128xf32, #tpu.memory_space<vmem>>, %arg2: memref<5x16x128xf32, #tpu.memory_space<vmem>>, %arg3: memref<3x16x128xi32, #tpu.memory_space<vmem>>) attributes {dimension_semantics = [#tpu.dimension_semantics<parallel>], iteration_bounds = array<i64: 1>, scalar_prefetch = 0 : i64, scratch_operands = 0 : i64, tpu.core_type = #tpu.core_type<tc>, window_params = [{transform_indices = @transform_0, window_bounds = array<i64: 16, 128>}, {transform_indices = @transform_1, window_bounds = array<i64: 5, 16, 128>}, {transform_indices = @transform_2, window_bounds = array<i64: 3, 16, 128>}]} {
    %c0 = arith.constant 0 : index
    %c0_0 = arith.constant 0 : index
    %0 = vector.load %arg1[%c0, %c0_0] : memref<16x128xf32, #tpu.memory_space<vmem>>, vector<16x128xf32>
    %cst = arith.constant 2.000000e+00 : f32
    %1 = vector.broadcast %cst : f32 to vector<16x128xf32>
    %2 = arith.addf %0, %1 : vector<16x128xf32>
    %c0_1 = arith.constant 0 : index
    %c0_2 = arith.constant 0 : index
    %c0_3 = arith.constant 0 : index
    %3 = vector.load %arg2[%c0_1, %c0_2, %c0_3] : memref<5x16x128xf32, #tpu.memory_space<vmem>>, vector<1x16x128xf32>
    %4 = vector.shape_cast %3 : vector<1x16x128xf32> to vector<16x128xf32>
    %5 = vector.shape_cast %2 : vector<16x128xf32> to vector<1x16x128xf32>
    tpu.vector_store %arg2[%c0_1, %c0_2, %c0_3], %5 {strides = array<i32>} : memref<5x16x128xf32, #tpu.memory_space<vmem>>, vector<1x16x128xf32>,
    %cst_4 = arith.constant 3.000000e+00 : f32
    %6 = vector.broadcast %cst_4 : f32 to vector<16x128xf32>
    %7 = arith.subf %0, %6 : vector<16x128xf32>
    %c1 = arith.constant 1 : index
    %c0_5 = arith.constant 0 : index
    %c0_6 = arith.constant 0 : index
    %8 = vector.load %arg2[%c1, %c0_5, %c0_6] : memref<5x16x128xf32, #tpu.memory_space<vmem>>, vector<1x16x128xf32>
    %9 = vector.shape_cast %8 : vector<1x16x128xf32> to vector<16x128xf32>
    %10 = vector.shape_cast %7 : vector<16x128xf32> to vector<1x16x128xf32>
    tpu.vector_store %arg2[%c1, %c0_5, %c0_6], %10 {strides = array<i32>} : memref<5x16x128xf32, #tpu.memory_space<vmem>>, vector<1x16x128xf32>,
    %cst_7 = arith.constant 4.000000e+00 : f32
    %11 = vector.broadcast %cst_7 : f32 to vector<16x128xf32>
    %12 = arith.mulf %0, %11 : vector<16x128xf32>
    %c2 = arith.constant 2 : index
    %c0_8 = arith.constant 0 : index
    %c0_9 = arith.constant 0 : index
    %13 = vector.load %arg2[%c2, %c0_8, %c0_9] : memref<5x16x128xf32, #tpu.memory_space<vmem>>, vector<1x16x128xf32>
    %14 = vector.shape_cast %13 : vector<1x16x128xf32> to vector<16x128xf32>
    %15 = vector.shape_cast %12 : vector<16x128xf32> to vector<1x16x128xf32>
    tpu.vector_store %arg2[%c2, %c0_8, %c0_9], %15 {strides = array<i32>} : memref<5x16x128xf32, #tpu.memory_space<vmem>>, vector<1x16x128xf32>,
    %cst_10 = arith.constant 5.000000e+00 : f32
    %16 = vector.broadcast %cst_10 : f32 to vector<16x128xf32>
    %17 = arith.divf %0, %16 : vector<16x128xf32>
    %c3 = arith.constant 3 : index
    %c0_11 = arith.constant 0 : index
    %c0_12 = arith.constant 0 : index
    %18 = vector.load %arg2[%c3, %c0_11, %c0_12] : memref<5x16x128xf32, #tpu.memory_space<vmem>>, vector<1x16x128xf32>
    %19 = vector.shape_cast %18 : vector<1x16x128xf32> to vector<16x128xf32>
    %20 = vector.shape_cast %17 : vector<16x128xf32> to vector<1x16x128xf32>
    tpu.vector_store %arg2[%c3, %c0_11, %c0_12], %20 {strides = array<i32>} : memref<5x16x128xf32, #tpu.memory_space<vmem>>, vector<1x16x128xf32>,
    %21 = arith.mulf %0, %0 : vector<16x128xf32>
    %c4 = arith.constant 4 : index
    %c0_13 = arith.constant 0 : index
    %c0_14 = arith.constant 0 : index
    %22 = vector.load %arg2[%c4, %c0_13, %c0_14] : memref<5x16x128xf32, #tpu.memory_space<vmem>>, vector<1x16x128xf32>
    %23 = vector.shape_cast %22 : vector<1x16x128xf32> to vector<16x128xf32>
    %24 = vector.shape_cast %21 : vector<16x128xf32> to vector<1x16x128xf32>
    tpu.vector_store %arg2[%c4, %c0_13, %c0_14], %24 {strides = array<i32>} : memref<5x16x128xf32, #tpu.memory_space<vmem>>, vector<1x16x128xf32>,
    %cst_15 = arith.constant 1.000000e+00 : f32
    %25 = vector.broadcast %cst_15 : f32 to vector<16x128xf32>
    %26 = arith.cmpf ogt, %0, %25 : vector<16x128xf32>
    %c0_16 = arith.constant 0 : index
    %c0_17 = arith.constant 0 : index
    %c0_18 = arith.constant 0 : index
    %27 = vector.load %arg3[%c0_16, %c0_17, %c0_18] : memref<3x16x128xi32, #tpu.memory_space<vmem>>, vector<1x16x128xi32>
    %28 = arith.extui %26 : vector<16x128xi1> to vector<16x128xi32>
    %29 = vector.shape_cast %27 : vector<1x16x128xi32> to vector<16x128xi32>
    %30 = vector.shape_cast %28 : vector<16x128xi32> to vector<1x16x128xi32>
    %cst_19 = arith.constant dense<0> : vector<16x128xi32>
    %31 = arith.cmpi ne, %29, %cst_19 : vector<16x128xi32>
    tpu.vector_store %arg3[%c0_16, %c0_17, %c0_18], %30 {strides = array<i32>} : memref<3x16x128xi32, #tpu.memory_space<vmem>>, vector<1x16x128xi32>,
    %cst_20 = arith.constant 2.000000e+00 : f32
    %32 = vector.broadcast %cst_20 : f32 to vector<16x128xf32>
    %33 = arith.cmpf olt, %0, %32 : vector<16x128xf32>
    %c1_21 = arith.constant 1 : index
    %c0_22 = arith.constant 0 : index
    %c0_23 = arith.constant 0 : index
    %34 = vector.load %arg3[%c1_21, %c0_22, %c0_23] : memref<3x16x128xi32, #tpu.memory_space<vmem>>, vector<1x16x128xi32>
    %35 = arith.extui %33 : vector<16x128xi1> to vector<16x128xi32>
    %36 = vector.shape_cast %34 : vector<1x16x128xi32> to vector<16x128xi32>
    %37 = vector.shape_cast %35 : vector<16x128xi32> to vector<1x16x128xi32>
    %cst_24 = arith.constant dense<0> : vector<16x128xi32>
    %38 = arith.cmpi ne, %36, %cst_24 : vector<16x128xi32>
    tpu.vector_store %arg3[%c1_21, %c0_22, %c0_23], %37 {strides = array<i32>} : memref<3x16x128xi32, #tpu.memory_space<vmem>>, vector<1x16x128xi32>,
    %cst_25 = arith.constant 0.000000e+00 : f32
    %39 = vector.broadcast %cst_25 : f32 to vector<16x128xf32>
    %40 = arith.cmpf oeq, %0, %39 : vector<16x128xf32>
    %c2_26 = arith.constant 2 : index
    %c0_27 = arith.constant 0 : index
    %c0_28 = arith.constant 0 : index
    %41 = vector.load %arg3[%c2_26, %c0_27, %c0_28] : memref<3x16x128xi32, #tpu.memory_space<vmem>>, vector<1x16x128xi32>
    %42 = arith.extui %40 : vector<16x128xi1> to vector<16x128xi32>
    %43 = vector.shape_cast %41 : vector<1x16x128xi32> to vector<16x128xi32>
    %44 = vector.shape_cast %42 : vector<16x128xi32> to vector<1x16x128xi32>
    %cst_29 = arith.constant dense<0> : vector<16x128xi32>
    %45 = arith.cmpi ne, %43, %cst_29 : vector<16x128xi32>
    tpu.vector_store %arg3[%c2_26, %c0_27, %c0_28], %44 {strides = array<i32>} : memref<3x16x128xi32, #tpu.memory_space<vmem>>, vector<1x16x128xi32>,
    return
  }
  func.func @transform_0(%arg0: i32) -> (i32, i32) {
    %c0_i32 = arith.constant 0 : i32
    %c0_i32_0 = arith.constant 0 : i32
    return %arg0, %c0_i32 : i32, i32
  }
  func.func @transform_1(%arg0: i32) -> (i32, i32, i32) {
    %c0_i32 = arith.constant 0 : i32
    %c0_i32_0 = arith.constant 0 : i32
    %c0_i32_1 = arith.constant 0 : i32
    return %c0_i32, %arg0, %c0_i32_0 : i32, i32, i32
  }
  func.func @transform_2(%arg0: i32) -> (i32, i32, i32) {
    %c0_i32 = arith.constant 0 : i32
    %c0_i32_0 = arith.constant 0 : i32
    %c0_i32_1 = arith.constant 0 : i32
    return %c0_i32, %arg0, %c0_i32_0 : i32, i32, i32
  }
}

module attributes {stable_mosaic.version = 11 : i64} {
  func.func @_elementwise_kernel(%arg0: i32, %arg1: memref<16x128xf32, #tpu.memory_space<vmem>>, %arg2: memref<5x16x128xf32, #tpu.memory_space<vmem>>, %arg3: memref<3x16x128xi8, #tpu.memory_space<vmem>>) attributes {dimension_semantics = [#tpu.dimension_semantics<parallel>], iteration_bounds = array<i64: 1>, scalar_prefetch = 0 : i64, scratch_operands = 0 : i64, tpu.core_type = #tpu.core_type<tc>, window_params = [{transform_indices = @transform_0, window_bounds = array<i64: 16, 128>}, {transform_indices = @transform_1, window_bounds = array<i64: 5, 16, 128>}, {transform_indices = @transform_2, window_bounds = array<i64: 3, 16, 128>}]} {
    %c0 = arith.constant 0 : index
    %c0_0 = arith.constant 0 : index
    %0 = vector.load %arg1[%c0, %c0_0] : memref<16x128xf32, #tpu.memory_space<vmem>>, vector<16x128xf32>
    %cst = arith.constant 2.000000e+00 : f32
    %1 = vector.broadcast %cst : f32 to vector<16x128xf32>
    %2 = arith.addf %0, %1 : vector<16x128xf32>
    %c0_1 = arith.constant 0 : index
    %c0_2 = arith.constant 0 : index
    %c0_3 = arith.constant 0 : index
    %3 = vector.load %arg2[%c0_1, %c0_2, %c0_3] : memref<5x16x128xf32, #tpu.memory_space<vmem>>, vector<1x16x128xf32>
    %4 = vector.shape_cast %3 : vector<1x16x128xf32> to vector<16x128xf32>
    %5 = vector.shape_cast %2 : vector<16x128xf32> to vector<1x16x128xf32>
    tpu.vector_store %arg2[%c0_1, %c0_2, %c0_3], %5 {strides = array<i32>} : memref<5x16x128xf32, #tpu.memory_space<vmem>>, vector<1x16x128xf32>,
    %cst_4 = arith.constant 3.000000e+00 : f32
    %6 = vector.broadcast %cst_4 : f32 to vector<16x128xf32>
    %7 = arith.subf %0, %6 : vector<16x128xf32>
    %c1 = arith.constant 1 : index
    %c0_5 = arith.constant 0 : index
    %c0_6 = arith.constant 0 : index
    %8 = vector.load %arg2[%c1, %c0_5, %c0_6] : memref<5x16x128xf32, #tpu.memory_space<vmem>>, vector<1x16x128xf32>
    %9 = vector.shape_cast %8 : vector<1x16x128xf32> to vector<16x128xf32>
    %10 = vector.shape_cast %7 : vector<16x128xf32> to vector<1x16x128xf32>
    tpu.vector_store %arg2[%c1, %c0_5, %c0_6], %10 {strides = array<i32>} : memref<5x16x128xf32, #tpu.memory_space<vmem>>, vector<1x16x128xf32>,
    %cst_7 = arith.constant 4.000000e+00 : f32
    %11 = vector.broadcast %cst_7 : f32 to vector<16x128xf32>
    %12 = arith.mulf %0, %11 : vector<16x128xf32>
    %c2 = arith.constant 2 : index
    %c0_8 = arith.constant 0 : index
    %c0_9 = arith.constant 0 : index
    %13 = vector.load %arg2[%c2, %c0_8, %c0_9] : memref<5x16x128xf32, #tpu.memory_space<vmem>>, vector<1x16x128xf32>
    %14 = vector.shape_cast %13 : vector<1x16x128xf32> to vector<16x128xf32>
    %15 = vector.shape_cast %12 : vector<16x128xf32> to vector<1x16x128xf32>
    tpu.vector_store %arg2[%c2, %c0_8, %c0_9], %15 {strides = array<i32>} : memref<5x16x128xf32, #tpu.memory_space<vmem>>, vector<1x16x128xf32>,
    %cst_10 = arith.constant 5.000000e+00 : f32
    %16 = vector.broadcast %cst_10 : f32 to vector<16x128xf32>
    %17 = arith.divf %0, %16 : vector<16x128xf32>
    %c3 = arith.constant 3 : index
    %c0_11 = arith.constant 0 : index
    %c0_12 = arith.constant 0 : index
    %18 = vector.load %arg2[%c3, %c0_11, %c0_12] : memref<5x16x128xf32, #tpu.memory_space<vmem>>, vector<1x16x128xf32>
    %19 = vector.shape_cast %18 : vector<1x16x128xf32> to vector<16x128xf32>
    %20 = vector.shape_cast %17 : vector<16x128xf32> to vector<1x16x128xf32>
    tpu.vector_store %arg2[%c3, %c0_11, %c0_12], %20 {strides = array<i32>} : memref<5x16x128xf32, #tpu.memory_space<vmem>>, vector<1x16x128xf32>,
    %21 = arith.mulf %0, %0 : vector<16x128xf32>
    %c4 = arith.constant 4 : index
    %c0_13 = arith.constant 0 : index
    %c0_14 = arith.constant 0 : index
    %22 = vector.load %arg2[%c4, %c0_13, %c0_14] : memref<5x16x128xf32, #tpu.memory_space<vmem>>, vector<1x16x128xf32>
    %23 = vector.shape_cast %22 : vector<1x16x128xf32> to vector<16x128xf32>
    %24 = vector.shape_cast %21 : vector<16x128xf32> to vector<1x16x128xf32>
    tpu.vector_store %arg2[%c4, %c0_13, %c0_14], %24 {strides = array<i32>} : memref<5x16x128xf32, #tpu.memory_space<vmem>>, vector<1x16x128xf32>,
    %cst_15 = arith.constant 1.000000e+00 : f32
    %25 = vector.broadcast %cst_15 : f32 to vector<16x128xf32>
    %26 = arith.cmpf ogt, %0, %25 : vector<16x128xf32>
    %27 = arith.extui %26 : vector<16x128xi1> to vector<16x128xi8>
    %c0_16 = arith.constant 0 : index
    %c0_17 = arith.constant 0 : index
    %c0_18 = arith.constant 0 : index
    %28 = vector.load %arg3[%c0_16, %c0_17, %c0_18] : memref<3x16x128xi8, #tpu.memory_space<vmem>>, vector<1x16x128xi8>
    %29 = vector.shape_cast %28 : vector<1x16x128xi8> to vector<16x128xi8>
    %30 = vector.shape_cast %27 : vector<16x128xi8> to vector<1x16x128xi8>
    tpu.vector_store %arg3[%c0_16, %c0_17, %c0_18], %30 {strides = array<i32>} : memref<3x16x128xi8, #tpu.memory_space<vmem>>, vector<1x16x128xi8>,
    %cst_19 = arith.constant 2.000000e+00 : f32
    %31 = vector.broadcast %cst_19 : f32 to vector<16x128xf32>
    %32 = arith.cmpf olt, %0, %31 : vector<16x128xf32>
    %33 = arith.extui %32 : vector<16x128xi1> to vector<16x128xi8>
    %c1_20 = arith.constant 1 : index
    %c0_21 = arith.constant 0 : index
    %c0_22 = arith.constant 0 : index
    %34 = vector.load %arg3[%c1_20, %c0_21, %c0_22] : memref<3x16x128xi8, #tpu.memory_space<vmem>>, vector<1x16x128xi8>
    %35 = vector.shape_cast %34 : vector<1x16x128xi8> to vector<16x128xi8>
    %36 = vector.shape_cast %33 : vector<16x128xi8> to vector<1x16x128xi8>
    tpu.vector_store %arg3[%c1_20, %c0_21, %c0_22], %36 {strides = array<i32>} : memref<3x16x128xi8, #tpu.memory_space<vmem>>, vector<1x16x128xi8>,
    %cst_23 = arith.constant 0.000000e+00 : f32
    %37 = vector.broadcast %cst_23 : f32 to vector<16x128xf32>
    %38 = arith.cmpf oeq, %0, %37 : vector<16x128xf32>
    %39 = arith.extui %38 : vector<16x128xi1> to vector<16x128xi8>
    %c2_24 = arith.constant 2 : index
    %c0_25 = arith.constant 0 : index
    %c0_26 = arith.constant 0 : index
    %40 = vector.load %arg3[%c2_24, %c0_25, %c0_26] : memref<3x16x128xi8, #tpu.memory_space<vmem>>, vector<1x16x128xi8>
    %41 = vector.shape_cast %40 : vector<1x16x128xi8> to vector<16x128xi8>
    %42 = vector.shape_cast %39 : vector<16x128xi8> to vector<1x16x128xi8>
    tpu.vector_store %arg3[%c2_24, %c0_25, %c0_26], %42 {strides = array<i32>} : memref<3x16x128xi8, #tpu.memory_space<vmem>>, vector<1x16x128xi8>,
    return
  }
  func.func @transform_0(%arg0: i32) -> (i32, i32) {
    %c0_i32 = arith.constant 0 : i32
    %c0_i32_0 = arith.constant 0 : i32
    return %arg0, %c0_i32 : i32, i32
  }
  func.func @transform_1(%arg0: i32) -> (i32, i32, i32) {
    %c0_i32 = arith.constant 0 : i32
    %c0_i32_0 = arith.constant 0 : i32
    %c0_i32_1 = arith.constant 0 : i32
    return %c0_i32, %arg0, %c0_i32_0 : i32, i32, i32
  }
  func.func @transform_2(%arg0: i32) -> (i32, i32, i32) {
    %c0_i32 = arith.constant 0 : i32
    %c0_i32_0 = arith.constant 0 : i32
    %c0_i32_1 = arith.constant 0 : i32
    return %c0_i32, %arg0, %c0_i32_0 : i32, i32, i32
  }
}

</mosaic_0001>

<bundles_post_ra>
// kernel: tpu_custom_call.1
= control target key start
LH: loop header
LB: loop body
LE: loop exit
PB: predicated region body
PF: predicated region fallthrough
CT: control target
= control target key end

     0   :  { %8 = vsyncpa [#allocation3], 0  ;;  %s220_s0 = inlined_call_operand.hbm [shape: f32[16,128], index: 0, kind: input, shape index: {}]   ;;  %s221_s1 = inlined_call_operand.hbm [shape: f32[5,16,128], index: 1, kind: output, shape index: {0}]   ;;  %s222_s2 = inlined_call_operand.vmem [shape: s32[3,16,128], index: 2, kind: output, shape index: {1}]  }
   0x1   :  { %9 = vsyncpa [#allocation4], 0  ;;  %s14_s11 = sshll.u32 %s220_s0, 4  ;;  %s169_s12 = smov [#allocation2]   ;;  %s15_s11 = int_to_ptr.hbm [resolvable:$true] %s14_s11 }
   0x2   :  { %s16_s13 = sshll.u32 %s169_s12, 4  ;;  %s170_s14 = smov 128   ;;  %s17_s13 = int_to_ptr.vmem [resolvable:$true] %s16_s13 }
   0x3   :  { %s171_s15 = smov 8  }
   0x4   :  { %22 = dma.hbm_to_vmem [thread:$0]  %s15_s11, 256, %s17_s13, [#allocation3], %s170_s14, %s170_s14, %s171_s15  }
   0x5   :  { %165 = dma.done.wait [#allocation3], 256  }
   0x6   :  { %166 = vsyncadd [#allocation3], 4294967040  ;;  %v172_v0 = vmov 5.0   ;;  %v27_v2 = vld [vmem:[#allocation2] sm:$0xff]  ;;  %v28_v3 = vld [vmem:[#allocation2 + $0x8] sm:$0xff]  ;;  %v173_v16 = vmov 0  }
   0x7   :  { %115 = vrcp.f32 %v172_v0  ;;  %v29_v4 = vadd.f32 2.0, %v27_v2  ;;  %v30_v5 = vadd.f32 2.0, %v28_v3  ;;  %v103_v6 = vadd.f32 -3.0, %v27_v2  ;;  %s174_s19 = smov [#allocation5]   ;;  %s86_s23 = sshll.u32 %s221_s1, 4  ;;  %s87_s23 = int_to_ptr.hbm [resolvable:$true] %s86_s23 }
   0x8   :  { %v104_v7 = vadd.f32 -3.0, %v28_v3  ;;  %v38_v9 = vmul.f32 4.0, %v27_v2  ;;  %v39_v10 = vmul.f32 4.0, %v28_v3  ;;  %v55_v12 = vmul.f32 %v27_v2, %v27_v2  ;;  %s84_s20 = sshll.u32 %s174_s19, 4  ;;  %s85_s20 = int_to_ptr.vmem [resolvable:$true] %s84_s20 }
   0x9   :  { %31 = vst [vmem:[#allocation5] sm:$0xff] %v29_v4  ;;  %vm60_vm0 = vcmp.gt.f32.partialorder %v27_v2, 1.0  ;;  %v56_v14 = vmul.f32 %v28_v3, %v28_v3  ;;  %vm61_vm1 = vcmp.gt.f32.partialorder %v28_v3, 1.0  ;;  %vm66_vm3 = vcmp.lt.f32.partialorder %v27_v2, 2.0 }
   0xa   :  { %32 = vst [vmem:[#allocation5 + $0x8] sm:$0xff] %v30_v5  ;;  %v62_v17 = vsel %vm60_vm0, 1, %v173_v16  ;;  %v63_v18 = vsel %vm61_vm1, 1, %v173_v16  ;;  %vm67_vm4 = vcmp.lt.f32.partialorder %v28_v3, 2.0  ;;  %vm73_vm5 = vcmp.eq.f32.partialorder %v27_v2, 0.0 }
   0xb   :  { %36 = vst [vmem:[#allocation5 + $0x10] sm:$0xff] %v103_v6  ;;  %v68_v22 = vsel %vm66_vm3, 1, %v173_v16  ;;  %vm74_vm6 = vcmp.eq.f32.partialorder %v28_v3, 0.0  ;;  %v69_v23 = vsel %vm67_vm4, 1, %v173_v16  ;;  %v75_v24 = vsel %vm73_vm5, 1, %v173_v16 }
   0xc   :  { %37 = vst [vmem:[#allocation5 + $0x18] sm:$0xff] %v104_v7  ;;  %v76_v25 = vsel %vm74_vm6, 1, %v173_v16 }
   0xd   :  { %v116_v1 = vpop.eup %115  ;;  %41 = vst [vmem:[#allocation5 + $0x20] sm:$0xff] %v38_v9 }
   0xe   :  { %v44_v8 = vmul.f32 5.0, %v116_v1  ;;  %vm48_vm2 = vweird.f32 %v116_v1  ;;  %42 = vst [vmem:[#allocation5 + $0x28] sm:$0xff] %v39_v10 }
   0xf   :  { %58 = vst [vmem:[#allocation5 + $0x40] sm:$0xff] %v55_v12 }
  0x10   :  { %v45_v11 = vsub.f32 1.0, %v44_v8  ;;  %59 = vst [vmem:[#allocation5 + $0x48] sm:$0xff] %v56_v14 }
  0x11   :  { %64 = vst [vmem:[%s222_s2] sm:$0xff] %v62_v17 }
  0x12   :  { %v46_v13 = vmul.f32 %v116_v1, %v45_v11  ;;  %65 = vst [vmem:[%s222_s2 + $0x8] sm:$0xff] %v63_v18 }
  0x13   :  { %105 = vst [vmem:[%s222_s2 + $0x10] sm:$0xff] %v68_v22 }
  0x14   :  { %v47_v15 = vadd.f32 %v116_v1, %v46_v13  ;;  %106 = vst [vmem:[%s222_s2 + $0x18] sm:$0xff] %v69_v23 }
  0x15   :  { %107 = vst [vmem:[%s222_s2 + $0x20] sm:$0xff] %v75_v24 }
  0x16   :  { %v49_v19 = vsel %vm48_vm2, %v116_v1, %v47_v15  ;;  %108 = vst [vmem:[%s222_s2 + $0x28] sm:$0xff] %v76_v25 }
  0x17   :  { %v50_v20 = vmul.f32 %v49_v19, %v27_v2  ;;  %v51_v21 = vmul.f32 %v49_v19, %v28_v3 }
  0x19   :  { %53 = vst [vmem:[#allocation5 + $0x30] sm:$0xff] %v50_v20 }
  0x1a   :  { %54 = vst [vmem:[#allocation5 + $0x38] sm:$0xff] %v51_v21 }
  0x1b   :  { %92 = dma.vmem_to_hbm [thread:$0]  %s85_s20, 1280, %s87_s23, [#allocation4], %s170_s14, %s170_s14, %s171_s15  }
  0x1c   :  { %167 = dma.done.wait [#allocation4], 1280  }
  0x1d   :  { %168 = vsyncadd [#allocation4], 4294966016 }
  0x1e   :  { %101 = vsyncpa [#allocation3], 1 }
  0x1f   :  { %102 = vsyncpa [#allocation4], 1 }

// kernel: tpu_custom_call.1
= control target key start
LH: loop header
LB: loop body
LE: loop exit
PB: predicated region body
PF: predicated region fallthrough
CT: control target
= control target key end

     0   :  { %8 = vsyncpa [#allocation3], 0  ;;  %s283_s0 = inlined_call_operand.hbm [shape: f32[16,128], index: 0, kind: input, shape index: {}]   ;;  %s284_s1 = inlined_call_operand.hbm [shape: f32[5,16,128], index: 1, kind: output, shape index: {0}]   ;;  %s285_s2 = inlined_call_operand.hbm [shape: s8[3,16,128], index: 2, kind: output, shape index: {1}]  }
   0x1   :  { %9 = vsyncpa [#allocation4], 0 }
   0x2   :  { %10 = vsyncpa [#allocation7], 0  ;;  %s15_s11 = sshll.u32 %s283_s0, 4  ;;  %s241_s12 = smov [#allocation2]   ;;  %s16_s11 = int_to_ptr.hbm [resolvable:$true] %s15_s11 }
   0x3   :  { %s17_s13 = sshll.u32 %s241_s12, 4  ;;  %s242_s14 = smov 128   ;;  %s18_s13 = int_to_ptr.vmem [resolvable:$true] %s17_s13 }
   0x4   :  { %s243_s15 = smov 8  }
   0x5   :  { %23 = dma.hbm_to_vmem [thread:$0]  %s16_s11, 256, %s18_s13, [#allocation3], %s242_s14, %s242_s14, %s243_s15  }
   0x6   :  { %235 = dma.done.wait [#allocation3], 256  }
   0x7   :  { %236 = vsyncadd [#allocation3], 4294967040  ;;  %v244_v0 = vmov 5.0   ;;  %v30_v2 = vld [vmem:[#allocation2] sm:$0xff]  ;;  %v31_v3 = vld [vmem:[#allocation2 + $0x8] sm:$0xff]  ;;  %v245_v13 = vmov 0  }
   0x8   :  { %161 = vrcp.f32 %v244_v0  ;;  %v32_v4 = vadd.f32 2.0, %v30_v2  ;;  %v33_v5 = vadd.f32 2.0, %v31_v3  ;;  %v150_v6 = vadd.f32 -3.0, %v30_v2  ;;  %s246_s0 = smov [#allocation5]   ;;  %s119_s19 = sshll.u32 %s284_s1, 4  ;;  %s120_s19 = int_to_ptr.hbm [resolvable:$true] %s119_s19 }
   0x9   :  { %v151_v7 = vadd.f32 -3.0, %v31_v3  ;;  %v41_v9 = vmul.f32 4.0, %v30_v2  ;;  %v42_v10 = vmul.f32 4.0, %v31_v3  ;;  %vm63_vm0 = vcmp.gt.f32.partialorder %v30_v2, 1.0  ;;  %s271_s16 = sshll.u32 %s246_s0, 4  ;;  %s247_s1 = smov [#allocation6]   ;;  %s118_s16 = int_to_ptr.vmem [resolvable:$true] %s271_s16 }
   0xa   :  { %34 = vst [vmem:[#allocation5] sm:$0xff] %v32_v4  ;;  %vm64_vm1 = vcmp.gt.f32.partialorder %v31_v3, 1.0  ;;  %vm79_vm3 = vcmp.lt.f32.partialorder %v30_v2, 2.0  ;;  %vm80_vm4 = vcmp.lt.f32.partialorder %v31_v3, 2.0  ;;  %vm96_vm5 = vcmp.eq.f32.partialorder %v30_v2, 0.0  ;;  %s130_s20 = sshll.u32 %s247_s1, 4  ;;  %s131_s20 = int_to_ptr.vmem [resolvable:$true] %s130_s20 }
   0xb   :  { %35 = vst [vmem:[#allocation5 + $0x8] sm:$0xff] %v33_v5  ;;  %vm65_vm2 = vmpackc.low %vm64_vm1, %vm63_vm0  ;;  %v58_v12 = vmul.f32 %v30_v2, %v30_v2  ;;  %vm97_vm7 = vcmp.eq.f32.partialorder %v31_v3, 0.0  ;;  %v59_v16 = vmul.f32 %v31_v3, %v31_v3  ;;  %s132_s23 = sshll.u32 %s285_s2, 4  ;;  %s248_s24 = smov 32   ;;  %s133_s23 = int_to_ptr.hbm [resolvable:$true] %s132_s23 }
   0xc   :  { %39 = vst [vmem:[#allocation5 + $0x10] sm:$0xff] %v150_v6  ;;  %v66_v14 = vsel %vm65_vm2, 16711935, %v245_v13  ;;  %vm81_vm6 = vmpackc.low %vm80_vm4, %vm79_vm3  ;;  %s249_s2 = smov 2  }
   0xd   :  { %40 = vst [vmem:[#allocation5 + $0x18] sm:$0xff] %v151_v7  ;;  %v68_v17 = vpack.c.b8 %v66_v14, %v66_v14  ;;  %v82_v18 = vsel %vm81_vm6, 16711935, %v245_v13  ;;  %vm98_vm8 = vmpackc.low %vm97_vm7, %vm96_vm5 }
   0xe   :  { %v162_v1 = vpop.eup %161  ;;  %44 = vst [vmem:[#allocation5 + $0x20] sm:$0xff] %v41_v9  ;;  %v84_v19 = vpack.c.b8 %v82_v18, %v82_v18  ;;  %v99_v20 = vsel %vm98_vm8, 16711935, %v245_v13 }
   0xf   :  { %v47_v8 = vmul.f32 5.0, %v162_v1  ;;  %vm51_vm9 = vweird.f32 %v162_v1  ;;  %45 = vst [vmem:[#allocation5 + $0x28] sm:$0xff] %v42_v10  ;;  %vm69_vm10 = vnez %v68_v17  ;;  %v101_v22 = vpack.c.b8 %v99_v20, %v99_v20 }
  0x10   :  { %61 = vst [vmem:[#allocation5 + $0x40] sm:$0xff] %v58_v12  ;;  %v70_v23 = vsel %vm69_vm10, 16843009, %v245_v13  ;;  %vm85_vm11 = vnez %v84_v19 }
  0x11   :  { %v48_v11 = vsub.f32 1.0, %v47_v8  ;;  %62 = vst [vmem:[#allocation5 + $0x48] sm:$0xff] %v59_v16  ;;  %v71_v25 = vunpack.c.0.s8 %v70_v23  ;;  %v72_v26 = vunpack.c.1.s8 %v70_v23  ;;  %v86_v27 = vsel %vm85_vm11, 16843009, %v245_v13 }
  0x12   :  { %v87_v30 = vunpack.c.0.s8 %v86_v27  ;;  %v88_v31 = vunpack.c.1.s8 %v86_v27  ;;  %vm102_vm12 = vnez %v101_v22 }
  0x13   :  { %v49_v15 = vmul.f32 %v162_v1, %v48_v11  ;;  %v73_v32 = vpack.c.b16 %v71_v25, %v71_v25  ;;  %v75_v33 = vpack.c.b16 %v72_v26, %v72_v26  ;;  %v103_v36 = vsel %vm102_vm12, 16843009, %v245_v13 }
  0x14   :  { %v89_v34 = vpack.c.b16 %v87_v30, %v87_v30  ;;  %v91_v35 = vpack.c.b16 %v88_v31, %v88_v31  ;;  %v104_v39 = vunpack.c.0.s8 %v103_v36  ;;  %v105_v40 = vunpack.c.1.s8 %v103_v36 }
  0x15   :  { %v50_v21 = vadd.f32 %v162_v1, %v49_v15  ;;  %v74_v37 = vpack.c.b8 %v73_v32, %v73_v32  ;;  %v76_v38 = vpack.c.b8 %v75_v33, %v75_v33 }
  0x16   :  { %v90_v41 = vpack.c.b8 %v89_v34, %v89_v34  ;;  %v92_v42 = vpack.c.b8 %v91_v35, %v91_v35  ;;  %v106_v43 = vpack.c.b16 %v104_v39, %v104_v39  ;;  %v108_v44 = vpack.c.b16 %v105_v40, %v105_v40 }
  0x17   :  { %v52_v24 = vsel %vm51_vm9, %v162_v1, %v50_v21  ;;  %77 = vst [vmem:[#allocation6] sm:$0x3] %v74_v37 }
  0x18   :  { %v53_v28 = vmul.f32 %v52_v24, %v30_v2  ;;  %v54_v29 = vmul.f32 %v52_v24, %v31_v3  ;;  %78 = vst [vmem:[#allocation6 + $0x2] sm:$0x3] %v76_v38  ;;  %v107_v45 = vpack.c.b8 %v106_v43, %v106_v43  ;;  %v109_v46 = vpack.c.b8 %v108_v44, %v108_v44 }
  0x19   :  { %94 = vst [vmem:[#allocation6 + $0x4] sm:$0x3] %v90_v41 }
  0x1a   :  { %56 = vst [vmem:[#allocation5 + $0x30] sm:$0xff] %v53_v28 }
  0x1b   :  { %57 = vst [vmem:[#allocation5 + $0x38] sm:$0xff] %v54_v29 }
  0x1c   :  { %125 = dma.vmem_to_hbm [thread:$0]  %s118_s16, 1280, %s120_s19, [#allocation4], %s242_s14, %s242_s14, %s243_s15   ;;  %95 = vst [vmem:[#allocation6 + $0x6] sm:$0x3] %v92_v42 }
  0x1d   :  { %111 = vst [vmem:[#allocation6 + $0x8] sm:$0x3] %v107_v45 }
  0x1e   :  { %112 = vst [vmem:[#allocation6 + $0xa] sm:$0x3] %v109_v46 }
  0x1f   :  { %138 = dma.vmem_to_hbm [thread:$0]  %s131_s20, 192, %s133_s23, [#allocation7], %s248_s24, %s248_s24, %s249_s2  }
  0x20   :  { %237 = dma.done.wait [#allocation4], 1280  }
  0x21   :  { %238 = vsyncadd [#allocation4], 4294966016 }
  0x22   :  { %239 = dma.done.wait [#allocation7], 192  }
  0x23   :  { %240 = vsyncadd [#allocation7], 4294967104 }
  0x24   :  { %147 = vsyncpa [#allocation3], 1 }
  0x25   :  { %148 = vsyncpa [#allocation4], 1 }
  0x26   :  { %149 = vsyncpa [#allocation7], 1 }

</bundles_post_ra>
